<compile_context>
chip_gen: v7x
topology: tpu7x:2x2x1
jax: 0.10.0
libtpu: 0.0.40
codegen_flags: <defaults>
</compile_context>

<pallas_src>
import functools

import jax
import jax.numpy as jnp
from jax.experimental import pallas as pl
from jax.experimental.pallas import tpu as pltpu

LANE = 128        # lane width
MAX_TM = 8192     # max sublane rows per grid step (4 MiB per f32 input block)


@functools.lru_cache(maxsize=None)
def _tpu_info():
    """(num_tensorcores_per_device, vmem_capacity_bytes) — best effort."""
    n_cores, vmem = None, None
    try:
        info = pltpu.get_tpu_info()
        for attr in ("num_tensorcores", "tensorcores_per_chip", "num_cores",
                     "cores_per_chip", "core_count"):
            v = getattr(info, attr, None)
            if isinstance(v, int) and v > 0:
                n_cores = v
                break
        v = getattr(info, "vmem_capacity_bytes", None)
        if isinstance(v, int) and v > 0:
            vmem = v
    except Exception:
        pass
    if n_cores is None:
        try:
            kind = jax.devices()[0].device_kind.lower()
            # v7x (and megacore v4/v5p) expose 2 TensorCores per JAX device.
            n_cores = 2 if any(t in kind for t in ("v7", "v4", "v5p")) else 1
        except Exception:
            n_cores = 1
    if vmem is None:
        vmem = 64 << 20   # conservative fallback: v7x per-TensorCore capacity
    return n_cores, vmem


def _sublane_multiple(dtype):
    # Native tiling: (8,128) for 32-bit, (16,128) for bf16, (32,128) for int8.
    return max(8, 32 // jnp.dtype(dtype).itemsize)


def _l1_abs_sum(x, y):
    """sum(|x - y|) over all elements, computed by a Pallas kernel. f32 scalar."""
    assert x.shape == y.shape, "x and y must have the same shape"
    n = x.size

    xf = jnp.ravel(x)
    yf = jnp.ravel(y)

    rows = n // LANE
    rem = n - rows * LANE

    # Pad-free tail: the final (<=127) elements are summed in the epilogue
    # instead of jnp.pad-ing full HBM copies of x and y.
    tail = jnp.float32(0.0)
    if rem:
        xt = jax.lax.slice_in_dim(xf, rows * LANE, n)
        yt = jax.lax.slice_in_dim(yf, rows * LANE, n)
        tail = jnp.sum(jnp.abs(xt.astype(jnp.float32) - yt.astype(jnp.float32)))
    if rows == 0:
        return tail

    if rem:
        xm = jax.lax.slice_in_dim(xf, 0, rows * LANE)
        ym = jax.lax.slice_in_dim(yf, 0, rows * LANE)
    else:
        xm, ym = xf, yf
    x2 = xm.reshape(rows, LANE)
    y2 = ym.reshape(rows, LANE)

    # Tile size: 2-4 MiB blocks sit at ~86% of HBM roofline and amortize the
    # ~0.35 us/step pipeline overhead; rounded to the dtype sublane tile.
    sub = max(_sublane_multiple(x.dtype), _sublane_multiple(y.dtype))
    tm = min(MAX_TM, pl.cdiv(rows, sub) * sub)
    steps_total = pl.cdiv(rows, tm)

    # Split the row range across TensorCores only when the device has more
    # than one (v7x / megacore).  Single-TC v5e/v6e skip the split entirely.
    num_cores, vmem_cap = _tpu_info()
    n_splits = num_cores if (num_cores > 1 and steps_total >= num_cores) else 1
    per_core = pl.cdiv(steps_total, n_splits)

    last_block = steps_total - 1
    # Mask is needed only if the last real block is ragged or the core split
    # creates duplicate (clamped) blocks; it is applied on the tail block only.
    needs_mask = (rows % tm != 0) or (n_splits * per_core != steps_total)

    def data_map(c, i):
        # Clamp so no DMA is issued past the array; logically-invalid rows are
        # zeroed inside the kernel by the tail-block row mask.
        b = c * per_core + i
        if needs_mask:
            b = jnp.minimum(b, last_block)
        return (b, 0)

    def kernel(x_ref, y_ref, o_ref):
        c = pl.program_id(0)
        i = pl.program_id(1)

        @pl.when(i == 0)
        def _():
            o_ref[...] = jnp.zeros_like(o_ref)

        a = jnp.abs(x_ref[...].astype(jnp.float32)
                    - y_ref[...].astype(jnp.float32))

        def accumulate(v):
            # (tm,128) -> (tm//8, 8, 128) is layout-preserving; the axis-0 sum
            # is a pure VPU partial reduction into the resident output block.
            # The cross-lane reduce happens in the wrapper epilogue.
            o_ref[...] += v.reshape(tm // 8, 8, LANE).sum(axis=0)

        if needs_mask:
            b = c * per_core + i

            @pl.when(b < last_block)
            def _():
                accumulate(a)

            @pl.when(b >= last_block)  # ragged tail / clamped duplicate blocks
            def _():
                row_ids = b * tm + jax.lax.broadcasted_iota(
                    jnp.int32, (tm, LANE), 0)
                accumulate(jnp.where(row_ids < rows, a, 0.0))
        else:
            accumulate(a)

    isx = jnp.dtype(x.dtype).itemsize
    isy = jnp.dtype(y.dtype).itemsize

    # Explicit scoped-VMEM budget: 2 pipeline buffers per input + a few
    # tile-sized f32 temporaries + headroom, capped at 3/4 of physical VMEM.
    in_bytes_per_step = tm * LANE * (isx + isy)
    f32_tile_bytes = tm * LANE * 4
    vmem_limit = int(min(
        max(2 * in_bytes_per_step + 4 * f32_tile_bytes + (8 << 20), 16 << 20),
        vmem_cap * 3 // 4))

    cost = pl.CostEstimate(
        flops=3 * n,
        transcendentals=0,
        bytes_accessed=n * (isx + isy) + n_splits * 8 * LANE * 4,
    )

    partials = pl.pallas_call(
        kernel,
        out_shape=jax.ShapeDtypeStruct((n_splits * 8, LANE), jnp.float32),
        grid_spec=pltpu.PrefetchScalarGridSpec(
            num_scalar_prefetch=0,
            grid=(n_splits, per_core),
            in_specs=[
                pl.BlockSpec((tm, LANE), data_map),
                pl.BlockSpec((tm, LANE), data_map),
            ],
            out_specs=pl.BlockSpec((8, LANE), lambda c, i: (c, 0)),
        ),
        compiler_params=pltpu.CompilerParams(
            dimension_semantics=("parallel", "arbitrary"),
            vmem_limit_bytes=vmem_limit,
        ),
        cost_estimate=cost,
    )(x2, y2)

    # Tiny epilogue: cross-lane + cross-core reduce of the partials + tail.
    return jnp.sum(partials) + tail


def l1_loss(x, y, normalizer=None):
    """Matches L1Loss.forward: mean |x - y| if not normalizer, else sum/normalizer."""
    s = _l1_abs_sum(x, y)
    # NOTE: `not normalizer` mirrors the PyTorch reference's truthiness
    # (None / 0 -> mean path); normalizer must be a Python scalar, not traced.
    if not normalizer:
        return s / jnp.float32(x.size)
    return s / jnp.asarray(normalizer, jnp.float32)


if __name__ == "__main__":
    key = jax.random.PRNGKey(0)
    kx, ky, ka, kb, kc, kd = jax.random.split(key, 6)

    # NCHW inputs, small shapes: batch=2, channels=4, spatial=16x16
    x = jax.random.normal(kx, (2, 4, 16, 16), dtype=jnp.float32)
    y = jax.random.normal(ky, (2, 4, 16, 16), dtype=jnp.float32)

    # Default path: mean of |x - y|
    loss_mean = jax.block_until_ready(l1_loss(x, y))
    # Normalizer path: sum / normalizer
    loss_norm = jax.block_until_ready(l1_loss(x, y, normalizer=100.0))

    ref_mean = jnp.mean(jnp.abs(x - y))
    ref_norm = jnp.sum(jnp.abs(x - y)) / 100.0
    assert jnp.allclose(loss_mean, ref_mean, rtol=1e-5, atol=1e-5), (loss_mean, ref_mean)
    assert jnp.allclose(loss_norm, ref_norm, rtol=1e-5, atol=1e-5), (loss_norm, ref_norm)

    # Unaligned size (n % 128 != 0): exercises the pad-free tail path.
    a = jax.random.normal(ka, (1061,), dtype=jnp.float32)
    b = jax.random.normal(kb, (1061,), dtype=jnp.float32)
    got = jax.block_until_ready(l1_loss(a, b))
    assert jnp.allclose(got, jnp.mean(jnp.abs(a - b)), rtol=1e-5, atol=1e-5)

    # rows not a multiple of 8: exercises the masked partial tail block.
    c = jax.random.normal(kc, (10, 128), dtype=jnp.float32)
    d = jax.random.normal(kd, (10, 128), dtype=jnp.float32)
    got = jax.block_until_ready(l1_loss(c, d))
    assert jnp.allclose(got, jnp.mean(jnp.abs(c - d)), rtol=1e-5, atol=1e-5)

    print("KERNEL_OK")
</pallas_src>

<mosaic_0001>
module attributes {stable_mosaic.version = 11 : i64} {
  func.func @kernel(%arg0: i32, %arg1: i32, %arg2: memref<16x128xf32, #tpu.memory_space<vmem>>, %arg3: memref<16x128xf32, #tpu.memory_space<vmem>>, %arg4: memref<8x128xf32, #tpu.memory_space<vmem>>) attributes {dimension_semantics = [#tpu.dimension_semantics<parallel>, #tpu.dimension_semantics<arbitrary>], iteration_bounds = array<i64: 1, 1>, scalar_prefetch = 0 : i64, scratch_operands = 0 : i64, tpu.core_type = #tpu.core_type<tc>, window_params = [{transform_indices = @transform_0, window_bounds = array<i64: 16, 128>}, {transform_indices = @transform_1, window_bounds = array<i64: 16, 128>}, {transform_indices = @transform_2, window_bounds = array<i64: 8, 128>}]} {
    %c0_i32 = arith.constant 0 : i32
    %0 = arith.cmpi eq, %arg1, %c0_i32 : i32
    %1 = arith.extui %0 : i1 to i32
    %c0_i32_0 = arith.constant 0 : i32
    %2 = arith.cmpi ne, %1, %c0_i32_0 : i32
    scf.if %2 {
      %cst_8 = arith.constant 0.000000e+00 : f32
      %12 = vector.broadcast %cst_8 : f32 to vector<8x128xf32>
      %c0_9 = arith.constant 0 : index
      %c0_10 = arith.constant 0 : index
      %13 = vector.load %arg4[%c0_9, %c0_10] : memref<8x128xf32, #tpu.memory_space<vmem>>, vector<8x128xf32>
      tpu.vector_store %arg4[%c0_9, %c0_10], %12 {strides = array<i32>} : memref<8x128xf32, #tpu.memory_space<vmem>>, vector<8x128xf32>,
    } else {
    }
    %c0 = arith.constant 0 : index
    %c0_1 = arith.constant 0 : index
    %3 = vector.load %arg2[%c0, %c0_1] : memref<16x128xf32, #tpu.memory_space<vmem>>, vector<16x128xf32>
    %c0_2 = arith.constant 0 : index
    %c0_3 = arith.constant 0 : index
    %4 = vector.load %arg3[%c0_2, %c0_3] : memref<16x128xf32, #tpu.memory_space<vmem>>, vector<16x128xf32>
    %5 = arith.subf %3, %4 : vector<16x128xf32>
    %6 = math.absf %5 : vector<16x128xf32>
    %c0_4 = arith.constant 0 : index
    %c0_5 = arith.constant 0 : index
    %7 = vector.load %arg4[%c0_4, %c0_5] : memref<8x128xf32, #tpu.memory_space<vmem>>, vector<8x128xf32>
    %8 = vector.shape_cast %6 : vector<16x128xf32> to vector<2x8x128xf32>
    %cst = arith.constant dense<0.000000e+00> : vector<8x128xf32>
    %9 = vector.multi_reduction <add>, %8, %cst [0] : vector<2x8x128xf32> to vector<8x128xf32>
    %10 = arith.addf %7, %9 : vector<8x128xf32>
    %c0_6 = arith.constant 0 : index
    %c0_7 = arith.constant 0 : index
    %11 = vector.load %arg4[%c0_6, %c0_7] : memref<8x128xf32, #tpu.memory_space<vmem>>, vector<8x128xf32>
    tpu.vector_store %arg4[%c0_6, %c0_7], %10 {strides = array<i32>} : memref<8x128xf32, #tpu.memory_space<vmem>>, vector<8x128xf32>,
    return
  }
  func.func @transform_0(%arg0: i32, %arg1: i32) -> (i32, i32) {
    %c1_i32 = arith.constant 1 : i32
    %0 = arith.muli %arg0, %c1_i32 : i32
    %1 = arith.addi %0, %arg1 : i32
    %c0_i32 = arith.constant 0 : i32
    %c0_i32_0 = arith.constant 0 : i32
    return %1, %c0_i32 : i32, i32
  }
  func.func @transform_1(%arg0: i32, %arg1: i32) -> (i32, i32) {
    %c1_i32 = arith.constant 1 : i32
    %0 = arith.muli %arg0, %c1_i32 : i32
    %1 = arith.addi %0, %arg1 : i32
    %c0_i32 = arith.constant 0 : i32
    %c0_i32_0 = arith.constant 0 : i32
    return %1, %c0_i32 : i32, i32
  }
  func.func @transform_2(%arg0: i32, %arg1: i32) -> (i32, i32) {
    %c0_i32 = arith.constant 0 : i32
    %c0_i32_0 = arith.constant 0 : i32
    return %arg0, %c0_i32 : i32, i32
  }
}

</mosaic_0001>

<bundles_post_ra>
// kernel: tpu_custom_call.1
= control target key start
LH: loop header
LB: loop body
LE: loop exit
PB: predicated region body
PF: predicated region fallthrough
CT: control target
= control target key end

     0   :  { %7 = vsyncpa [#allocation3], 0  ;;  %s219_s0 = inlined_call_operand.hbm [shape: f32[16,128], index: 0, kind: input, shape index: {}]   ;;  %s220_s1 = inlined_call_operand.hbm [shape: f32[16,128], index: 1, kind: input, shape index: {}]   ;;  %s221_s2 = inlined_call_operand.hbm [shape: f32[8,128], index: 2, kind: output, shape index: {}]  }
   0x1   :  { %8 = vsyncpa [#allocation6], 0 }
   0x2   :  { %9 = vsyncpa [#allocation4], 0  ;;  %s163_s9 = smov [#allocation2]   ;;  %s91_s13 = scalar_lea.hbm %s219_s0, 256 }
   0x3   :  { %s19_s10 = sshll.u32 %s163_s9, 4  ;;  %p92_p0 = scmp.ne.s32.totalorder %s219_s0, %s91_s13  ;;  %s20_s10 = int_to_ptr.vmem [resolvable:$true] %s19_s10 }
   0x4   :  { %p95_p1 = scmp.lt.u32.totalorder %s91_s13, %s219_s0 }
   0x6   :  { %p97_p2 = pnand %p95_p1, %p92_p0 }
   0x8   :  { %100 = shalt.err (!%p97_p2)
}
   0x9   :  { %s101_s18 = scalar_lea.vmem %s20_s10, 256  ;;  %p106_p4 = scmp.lt.s32.totalorder %s20_s10, %s20_s10 }
   0xa   :  { %p102_p3 = scmp.ne.s32.totalorder %s20_s10, %s101_s18  ;;  %p107_p5 = scmp.lt.s32.totalorder %s101_s18, %s101_s18 }
   0xc   :  { %p108_p6 = por %p107_p5, %p106_p4 }
   0xe   :  { %p109_p7 = pnand %p108_p6, %p102_p3 }
  0x10   :  { %112 = shalt.err (!%p109_p7)
}
  0x11   :  { %s164_s19 = smov 128   ;;  %s165_s20 = smov 8  }
  0x12   :  { %25 = dma.hbm_to_vmem [thread:$0]  %s219_s0, 256, %s20_s10, [#allocation3], %s164_s19, %s164_s19, %s165_s20  }
  0x13   :  { %s166_s23 = smov [#allocation5]   ;;  %s113_s27 = scalar_lea.hbm %s220_s1, 256 }
  0x14   :  { %s35_s24 = sshll.u32 %s166_s23, 4  ;;  %p114_p8 = scmp.ne.s32.totalorder %s220_s1, %s113_s27  ;;  %s36_s24 = int_to_ptr.vmem [resolvable:$true] %s35_s24 }
  0x15   :  { %p117_p9 = scmp.lt.u32.totalorder %s113_s27, %s220_s1 }
  0x17   :  { %p119_p10 = pnand %p117_p9, %p114_p8 }
  0x19   :  { %122 = shalt.err (!%p119_p10)
}
  0x1a   :  { %s123_s4 = scalar_lea.vmem %s36_s24, 256  ;;  %p128_p12 = scmp.lt.s32.totalorder %s36_s24, %s36_s24 }
  0x1b   :  { %p124_p11 = scmp.ne.s32.totalorder %s36_s24, %s123_s4  ;;  %p129_p13 = scmp.lt.s32.totalorder %s123_s4, %s123_s4 }
  0x1d   :  { %p130_p0 = por %p129_p13, %p128_p12 }
  0x1f   :  { %p131_p1 = pnand %p130_p0, %p124_p11 }
  0x21   :  { %134 = shalt.err (!%p131_p1)
}
  0x22   :  { %41 = dma.hbm_to_vmem [thread:$0]  %s220_s1, 256, %s36_s24, [#allocation6], %s164_s19, %s164_s19, %s165_s20  }
  0x23   :  { %157 = dma.done.wait [#allocation3], 256  }
  0x24   :  { %158 = vsyncadd [#allocation3], 4294967040 }
  0x25   :  { %159 = dma.done.wait [#allocation6], 256  }
  0x26   :  { %160 = vsyncadd [#allocation6], 4294967040  ;;  %v57_v0 = vld [vmem:[#allocation2] sm:$0xff]  ;;  %v58_v1 = vld [vmem:[#allocation2 + $0x8] sm:$0xff]  ;;  %s167_s6 = smov [#allocation7]  }
  0x27   :  { %v59_v2 = vld [vmem:[#allocation5] sm:$0xff]  ;;  %v60_v3 = vld [vmem:[#allocation5 + $0x8] sm:$0xff]  ;;  %s75_s7 = sshll.u32 %s167_s6, 4  ;;  %s76_s7 = int_to_ptr.vmem [resolvable:$true] %s75_s7 }
  0x28   :  { %v61_v4 = vsub.f32 %v57_v0, %v59_v2  ;;  %v62_v5 = vsub.f32 %v58_v1, %v60_v3  ;;  %s135_s8 = scalar_lea.vmem %s76_s7, 128  ;;  %p140_p3 = scmp.lt.s32.totalorder %s76_s7, %s76_s7 }
  0x29   :  { %p136_p2 = scmp.ne.s32.totalorder %s76_s7, %s135_s8  ;;  %p141_p4 = scmp.lt.s32.totalorder %s135_s8, %s135_s8 }
  0x2a   :  { %v63_v6 = vand.u32 2147483647, %v61_v4  ;;  %v64_v7 = vand.u32 2147483647, %v62_v5 }
  0x2b   :  { %p142_p5 = por %p141_p4, %p140_p3 }
  0x2c   :  { %v66_v8 = vadd.f32 %v64_v7, %v63_v6 }
  0x2d   :  { %p143_p6 = pnand %p142_p5, %p136_p2 }
  0x2e   :  { %68 = vst [vmem:[#allocation7] sm:$0xff] %v66_v8 }
  0x2f   :  { %146 = shalt.err (!%p143_p6)
}
  0x30   :  { %s147_s10 = scalar_lea.hbm %s221_s2, 128 }
  0x31   :  { %p148_p7 = scmp.ne.s32.totalorder %s221_s2, %s147_s10  ;;  %p151_p8 = scmp.lt.u32.totalorder %s147_s10, %s221_s2 }
  0x33   :  { %p153_p9 = pnand %p151_p8, %p148_p7 }
  0x35   :  { %156 = shalt.err (!%p153_p9)
}
  0x36   :  { %78 = dma.vmem_to_hbm [thread:$0]  %s76_s7, 128, %s221_s2, [#allocation4]  }
  0x37   :  { %161 = dma.done.wait [#allocation4], 128  }
  0x38   :  { %162 = vsyncadd [#allocation4], 4294967168 }
  0x39   :  { %82 = vsyncpa [#allocation3], 1 }
  0x3a   :  { %83 = vsyncpa [#allocation6], 1 }
  0x3b   :  { %84 = vsyncpa [#allocation4], 1 }

</bundles_post_ra>
